<compile_context>
chip_gen: v7x
topology: tpu7x:2x2x1
jax: 0.10.0
libtpu: 0.0.40
codegen_flags: <defaults>
</compile_context>

<pallas_src>
import math

import jax
import jax.numpy as jnp
from jax.experimental import pallas as pl
from jax.experimental.pallas import tpu as pltpu


def _round_up(x, m):
    return ((x + m - 1) // m) * m


def _add_dyt_kernel(alpha_ref, x1_ref, x2_ref, w_ref, b_ref, o_ref):
    # alpha_ref: SMEM (1,1) f32; x1/x2/o: (row_tile, L) VMEM tiles; w/b: (1, L) f32.
    alpha = alpha_ref[0, 0]
    x = x1_ref[...].astype(jnp.float32) + x2_ref[...].astype(jnp.float32)
    t = jnp.tanh(alpha * x)                       # EUP; add/mul stay on VPU
    o_ref[...] = (t * w_ref[...] + b_ref[...]).astype(o_ref.dtype)


def add_and_dynamic_tanh_norm(input1, input2, weight, bias, alpha,
                              *, target_lane=512,
                              vmem_budget_bytes=24 * 1024 * 1024):
    """input1, input2: (B, S, D); weight, bias: (D,); alpha: scalar.

    out[b,s,d] = tanh(alpha * (input1 + input2)[b,s,d]) * weight[d] + bias[d]
    """
    B, S, D = input1.shape
    N = B * S * D
    out_dtype = input1.dtype
    in_bytes = jnp.dtype(input1.dtype).itemsize
    out_bytes = jnp.dtype(out_dtype).itemsize

    # ---- Lane width L -------------------------------------------------------
    if D % 128 == 0:
        L = D                                   # free reshape, never ragged
    else:
        lcm = (D * 128) // math.gcd(D, 128)
        if lcm > 4096:
            L = D                               # awkward D: block == full last dim
        else:
            cands = [lcm * m for m in range(1, max(1, 4096 // lcm) + 1)]
            exact = [c for c in cands if N % c == 0]
            pool = exact if exact else cands    # prefer no-pad lane widths
            L = min(pool, key=lambda c: abs(c - target_lane))

    pad = (-N) % L
    rows = (N + pad) // L

    # ---- Budget-derived row tile -------------------------------------------
    # Native packed sublane tile: 8 (f32) / 16 (bf16) / 32 (int8/fp8).
    sub_mult = {4: 8, 2: 16, 1: 32}.get(in_bytes, 8)
    bytes_per_row = (2 * in_bytes + out_bytes) * L
    budget_rows = max(1, vmem_budget_bytes // (2 * bytes_per_row))  # x2: double buffer
    if budget_rows >= rows:
        row_tile = rows                          # single block == full array dim
        grid_n = 1
    else:
        row_tile = max(sub_mult, (budget_rows // sub_mult) * sub_mult)
        grid_n = pl.cdiv(rows, row_tile)
        # v7x megacore: keep multi-step grids even so both TCs get equal work.
        if grid_n > 1 and grid_n % 2 == 1:
            rt = max(sub_mult, _round_up(pl.cdiv(rows, grid_n + 1), sub_mult))
            if rt < rows and pl.cdiv(rows, rt) % 2 == 0:
                row_tile, grid_n = rt, pl.cdiv(rows, rt)

    # ---- Pack operands (free reshapes unless the rare ragged-L case) --------
    def _as_slab(x):
        xf = x.reshape(-1)
        if pad:
            xf = jnp.pad(xf, (0, pad))
        return xf.reshape(rows, L)

    x1 = _as_slab(input1)
    x2 = _as_slab(input2)
    reps = L // D
    w_row = jnp.tile(weight.astype(jnp.float32).reshape(-1), reps).reshape(1, L)
    b_row = jnp.tile(bias.astype(jnp.float32).reshape(-1), reps).reshape(1, L)
    alpha_arr = jnp.asarray(alpha, dtype=jnp.float32).reshape(1, 1)

    cost = pl.CostEstimate(
        flops=5 * N,
        transcendentals=N,
        bytes_accessed=(2 * in_bytes + out_bytes) * N + 2 * 4 * L,
    )

    out = pl.pallas_call(
        _add_dyt_kernel,
        out_shape=jax.ShapeDtypeStruct((rows, L), out_dtype),
        grid_spec=pltpu.PrefetchScalarGridSpec(
            num_scalar_prefetch=0,
            grid=(grid_n,),
            in_specs=[
                pl.BlockSpec(memory_space=pltpu.MemorySpace.SMEM),   # alpha (1,1)
                pl.BlockSpec((row_tile, L), lambda i: (i, 0)),       # x1 tile
                pl.BlockSpec((row_tile, L), lambda i: (i, 0)),       # x2 tile
                pl.BlockSpec((1, L), lambda i: (0, 0)),              # weight row
                pl.BlockSpec((1, L), lambda i: (0, 0)),              # bias row
            ],
            out_specs=pl.BlockSpec((row_tile, L), lambda i: (i, 0)),
        ),
        compiler_params=pltpu.CompilerParams(
            dimension_semantics=("parallel",),
            vmem_limit_bytes=32 * 1024 * 1024,
        ),
        cost_estimate=cost,
    )(alpha_arr, x1, x2, w_row, b_row)

    if pad:
        out = out.reshape(-1)[:N]
    return out.reshape(B, S, D)


def _reference(input1, input2, weight, bias, alpha):
    x = (input1 + input2).astype(jnp.float32)
    y = jnp.tanh(jnp.float32(alpha) * x) * weight[None, None, :].astype(jnp.float32) \
        + bias[None, None, :].astype(jnp.float32)
    return y


if __name__ == "__main__":
    key = jax.random.PRNGKey(0)

    # --- Test 1: small shapes consistent with the module (batch=2, seq=8, D=32).
    B, S, D = 2, 8, 32
    k1, k2 = jax.random.split(key)
    input1 = jax.random.normal(k1, (B, S, D), dtype=jnp.float32)
    input2 = jax.random.normal(k2, (B, S, D), dtype=jnp.float32)
    # Parameter init matching the module: weight=ones, bias=zeros, alpha=0.5.
    weight = jnp.ones((D,), dtype=jnp.float32)
    bias = jnp.zeros((D,), dtype=jnp.float32)
    alpha = jnp.float32(0.5)

    out = add_and_dynamic_tanh_norm(input1, input2, weight, bias, alpha)
    out = jax.block_until_ready(out)
    ref = _reference(input1, input2, weight, bias, alpha)
    assert out.shape == (B, S, D)
    assert jnp.allclose(out, ref, atol=1e-6, rtol=1e-6), "f32 mismatch vs reference"

    # --- Test 2: D % 128 == 0 (L = D fast path), ragged row count vs row_tile,
    # bf16 activations (exercises explicit output cast + 16-row sublane tile).
    B2, S2, D2 = 4, 100, 128
    k3, k4 = jax.random.split(k1)
    a1 = jax.random.normal(k3, (B2, S2, D2), dtype=jnp.bfloat16)
    a2 = jax.random.normal(k4, (B2, S2, D2), dtype=jnp.bfloat16)
    w2 = jnp.ones((D2,), dtype=jnp.float32)
    b2 = jnp.zeros((D2,), dtype=jnp.float32)

    out2 = add_and_dynamic_tanh_norm(a1, a2, w2, b2, alpha)
    out2 = jax.block_until_ready(out2)
    ref2 = _reference(a1, a2, w2, b2, alpha)
    assert out2.shape == (B2, S2, D2)
    assert out2.dtype == jnp.bfloat16
    assert jnp.allclose(out2.astype(jnp.float32), ref2, atol=3e-2, rtol=3e-2), \
        "bf16 mismatch vs reference"

    print("KERNEL_OK")
</pallas_src>

<mosaic_0001>
module attributes {stable_mosaic.version = 11 : i64} {
  func.func @_add_dyt_kernel(%arg0: i32, %arg1: memref<1x1xf32, #tpu.memory_space<smem>>, %arg2: memref<1x512xf32, #tpu.memory_space<vmem>>, %arg3: memref<1x512xf32, #tpu.memory_space<vmem>>, %arg4: memref<1x512xf32, #tpu.memory_space<vmem>>, %arg5: memref<1x512xf32, #tpu.memory_space<vmem>>, %arg6: memref<1x512xf32, #tpu.memory_space<vmem>>) attributes {dimension_semantics = [#tpu.dimension_semantics<parallel>], iteration_bounds = array<i64: 1>, scalar_prefetch = 0 : i64, scratch_operands = 0 : i64, tpu.core_type = #tpu.core_type<tc>, window_params = [{transform_indices = @transform_0, window_bounds = array<i64: 1, 1>}, {transform_indices = @transform_1, window_bounds = array<i64: 1, 512>}, {transform_indices = @transform_2, window_bounds = array<i64: 1, 512>}, {pipeline_mode = #tpu.pipeline_mode<synchronous>, transform_indices = @transform_3, window_bounds = array<i64: 1, 512>}, {pipeline_mode = #tpu.pipeline_mode<synchronous>, transform_indices = @transform_4, window_bounds = array<i64: 1, 512>}, {transform_indices = @transform_5, window_bounds = array<i64: 1, 512>}]} {
    %c0 = arith.constant 0 : index
    %c0_0 = arith.constant 0 : index
    %0 = memref.load %arg1[%c0, %c0_0] : memref<1x1xf32, #tpu.memory_space<smem>>
    %c0_1 = arith.constant 0 : index
    %c0_2 = arith.constant 0 : index
    %1 = vector.load %arg2[%c0_1, %c0_2] : memref<1x512xf32, #tpu.memory_space<vmem>>, vector<1x512xf32>
    %c0_3 = arith.constant 0 : index
    %c0_4 = arith.constant 0 : index
    %2 = vector.load %arg3[%c0_3, %c0_4] : memref<1x512xf32, #tpu.memory_space<vmem>>, vector<1x512xf32>
    %3 = arith.addf %1, %2 : vector<1x512xf32>
    %4 = vector.broadcast %0 : f32 to vector<1x512xf32>
    %5 = arith.mulf %4, %3 : vector<1x512xf32>
    %6 = math.tanh %5 : vector<1x512xf32>
    %c0_5 = arith.constant 0 : index
    %c0_6 = arith.constant 0 : index
    %7 = vector.load %arg4[%c0_5, %c0_6] : memref<1x512xf32, #tpu.memory_space<vmem>>, vector<1x512xf32>
    %8 = arith.mulf %6, %7 : vector<1x512xf32>
    %c0_7 = arith.constant 0 : index
    %c0_8 = arith.constant 0 : index
    %9 = vector.load %arg5[%c0_7, %c0_8] : memref<1x512xf32, #tpu.memory_space<vmem>>, vector<1x512xf32>
    %10 = arith.addf %8, %9 : vector<1x512xf32>
    %c0_9 = arith.constant 0 : index
    %c0_10 = arith.constant 0 : index
    %11 = vector.load %arg6[%c0_9, %c0_10] : memref<1x512xf32, #tpu.memory_space<vmem>>, vector<1x512xf32>
    tpu.vector_store %arg6[%c0_9, %c0_10], %10 {strides = array<i32>} : memref<1x512xf32, #tpu.memory_space<vmem>>, vector<1x512xf32>,
    return
  }
  func.func @transform_0(%arg0: i32) -> (i32, i32) {
    %c0_i32 = arith.constant 0 : i32
    %c0_i32_0 = arith.constant 0 : i32
    %c0_i32_1 = arith.constant 0 : i32
    return %c0_i32, %c0_i32_0 : i32, i32
  }
  func.func @transform_1(%arg0: i32) -> (i32, i32) {
    %c0_i32 = arith.constant 0 : i32
    %c0_i32_0 = arith.constant 0 : i32
    return %arg0, %c0_i32 : i32, i32
  }
  func.func @transform_2(%arg0: i32) -> (i32, i32) {
    %c0_i32 = arith.constant 0 : i32
    %c0_i32_0 = arith.constant 0 : i32
    return %arg0, %c0_i32 : i32, i32
  }
  func.func @transform_3(%arg0: i32) -> (i32, i32) {
    %c0_i32 = arith.constant 0 : i32
    %c0_i32_0 = arith.constant 0 : i32
    %c0_i32_1 = arith.constant 0 : i32
    return %c0_i32, %c0_i32_0 : i32, i32
  }
  func.func @transform_4(%arg0: i32) -> (i32, i32) {
    %c0_i32 = arith.constant 0 : i32
    %c0_i32_0 = arith.constant 0 : i32
    %c0_i32_1 = arith.constant 0 : i32
    return %c0_i32, %c0_i32_0 : i32, i32
  }
  func.func @transform_5(%arg0: i32) -> (i32, i32) {
    %c0_i32 = arith.constant 0 : i32
    %c0_i32_0 = arith.constant 0 : i32
    return %arg0, %c0_i32 : i32, i32
  }
}

</mosaic_0001>

<bundles_post_ra>
// kernel: tpu_custom_call.1
= control target key start
LH: loop header
LB: loop body
LE: loop exit
PB: predicated region body
PF: predicated region fallthrough
CT: control target
= control target key end

     0   :  { %11 = vsyncpa [#allocation4], 0  ;;  %s185_s0 = inlined_call_operand.<no memory space> [shape: f32[1,1], index: 0, kind: input, shape index: {}]   ;;  %s186_s1 = inlined_call_operand.hbm [shape: f32[1,512], index: 1, kind: input, shape index: {}]   ;;  %s187_s2 = inlined_call_operand.vmem [shape: f32[1,512], index: 2, kind: input, shape index: {}]   ;;  %s188_s3 = inlined_call_operand.vmem [shape: f32[1,512], index: 3, kind: input, shape index: {}]   ;;  %s189_s4 = inlined_call_operand.vmem [shape: f32[1,512], index: 4, kind: input, shape index: {}]   ;;  %s190_s5 = inlined_call_operand.hbm [shape: f32[1,512], index: 5, kind: output, shape index: {}]  }
   0x1   :  { %12 = vsyncpa [#allocation5], 0  ;;  %s117_s18 = smov [#allocation3]   ;;  %s69_s22 = scalar_lea.hbm %s186_s1, 64 }
   0x2   :  { %s21_s19 = sshll.u32 %s117_s18, 4  ;;  %p70_p0 = scmp.ne.s32.totalorder %s186_s1, %s69_s22  ;;  %s22_s19 = int_to_ptr.vmem [resolvable:$true] %s21_s19 }
   0x3   :  { %p73_p1 = scmp.lt.u32.totalorder %s69_s22, %s186_s1 }
   0x5   :  { %p75_p2 = pnand %p73_p1, %p70_p0 }
   0x7   :  { %78 = shalt.err (!%p75_p2)
}
   0x8   :  { %s79_s27 = scalar_lea.vmem %s22_s19, 64  ;;  %p84_p4 = scmp.lt.s32.totalorder %s22_s19, %s22_s19 }
   0x9   :  { %p80_p3 = scmp.ne.s32.totalorder %s22_s19, %s79_s27  ;;  %p85_p5 = scmp.lt.s32.totalorder %s79_s27, %s79_s27 }
   0xb   :  { %p86_p6 = por %p85_p5, %p84_p4 }
   0xd   :  { %p87_p7 = pnand %p86_p6, %p80_p3 }
   0xf   :  { %90 = shalt.err (!%p87_p7)
}
  0x10   :  { %24 = dma.hbm_to_vmem [thread:$0]  %s186_s1, 64, %s22_s19, [#allocation4]  }
  0x11   :  { %113 = dma.done.wait [#allocation4], 64  }
  0x12   :  { %114 = vsyncadd [#allocation4], 4294967232  ;;  %v35_v0 = vld [vmem:[#allocation3] sm:$0xf]  ;;  %v38_v2 = vstv %s185_s0  ;;  %v45_v6 = vlaneseq  ;;  %s118_s12 = smov [#allocation6]  }
  0x13   :  { %v36_v1 = vld [vmem:[%s187_s2] sm:$0xf]  ;;  %s56_s13 = sshll.u32 %s118_s12, 4  ;;  %s57_s13 = int_to_ptr.vmem [resolvable:$true] %s56_s13 }
  0x14   :  { %v37_v3 = vadd.f32 %v36_v1, %v35_v0  ;;  %v41_v5 = vld [vmem:[%s188_s3] sm:$0xf]  ;;  %vm47_vm0 = vcmp.lt.s32.totalorder %v45_v6, 512  ;;  %s91_s0 = scalar_lea.vmem %s57_s13, 64  ;;  %p96_p9 = scmp.lt.s32.totalorder %s57_s13, %s57_s13 }
  0x15   :  { %v43_v8 = vld [vmem:[%s189_s4] sm:$0xf]  ;;  %p92_p8 = scmp.ne.s32.totalorder %s57_s13, %s91_s0  ;;  %p97_p10 = scmp.lt.s32.totalorder %s91_s0, %s91_s0 }
  0x16   :  { %v39_v4 = vmul.f32 %v38_v2, %v37_v3 }
  0x17   :  { %p98_p11 = por %p97_p10, %p96_p9 }
  0x18   :  { %67 = vtanh.f32 %v39_v4 }
  0x19   :  { %p99_p12 = pnand %p98_p11, %p92_p8 }
  0x22   :  { %v68_v7 = vpop.eup %67 }
  0x23   :  { %v42_v9 = vmul.f32 %v68_v7, %v41_v5 }
  0x25   :  { %v44_v10 = vadd.f32 %v43_v8, %v42_v9 }
  0x27   :  { %49 = vst.msk [vmem:[#allocation6] sm:$0xf] %vm47_vm0, %v44_v10 }
  0x28   :  { %102 = shalt.err (!%p99_p12)
}
  0x29   :  { %s103_s14 = scalar_lea.hbm %s190_s5, 64 }
  0x2a   :  { %p104_p13 = scmp.ne.s32.totalorder %s190_s5, %s103_s14  ;;  %p107_p0 = scmp.lt.u32.totalorder %s103_s14, %s190_s5 }
  0x2c   :  { %p109_p1 = pnand %p107_p0, %p104_p13 }
  0x2e   :  { %112 = shalt.err (!%p109_p1)
}
  0x2f   :  { %59 = dma.vmem_to_hbm [thread:$0]  %s57_s13, 64, %s190_s5, [#allocation5]  }
  0x30   :  { %115 = dma.done.wait [#allocation5], 64  }
  0x31   :  { %116 = vsyncadd [#allocation5], 4294967232 }
  0x32   :  { %63 = vsyncpa [#allocation4], 1 }
  0x33   :  { %64 = vsyncpa [#allocation5], 1 }

</bundles_post_ra>
